<compile_context>
chip_gen: v5e
topology: v5e:2x2
jax: 0.10.0
libtpu: 0.0.40
codegen_flags: <defaults>
</compile_context>

<pallas_src>
import functools

import jax
import jax.numpy as jnp
from jax import lax
from jax.experimental import pallas as pl
from jax.experimental.pallas import tpu as pltpu


# Explicit scoped-VMEM budget: per-step working sets below are designed to stay well
# under this on every generation (v5e 128 MiB / v6e 128 MiB / v7x 64 MiB physical).
_VMEM_LIMIT_BYTES = 32 * 1024 * 1024


def _round_up(x, m):
    return ((x + m - 1) // m) * m


def _tile_and_pad(dim, target, align):
    """Pick a tile size and (possibly padded) dim.

    dim <= target      -> single full-extent block (legal: block == full dim).
    dim  > target      -> tile = align-rounded target; pad dim up to a multiple of it
                          (never emit a giant full-extent fallback block).
    """
    if dim <= target:
        return dim, dim
    t = max(align, (target // align) * align)
    if dim % t == 0:
        return t, dim
    return t, _round_up(dim, t)


# ----------------------------------------------------------------------------
# Tiled linear (matmul + bias) kernel
# ----------------------------------------------------------------------------
def linear_kernel(x_ref, w_ref, b_ref, o_ref, acc_ref):
    # x: (tm, tk) compute dtype, w: (tk, tn) compute dtype (pre-transposed),
    # b: (1, tn) f32, o: (tm, tn), acc: (tm, tn) f32 scratch.
    @pl.when(pl.program_id(2) == 0)
    def _init():
        acc_ref[...] = jnp.zeros_like(acc_ref)

    acc_ref[...] += jnp.dot(
        x_ref[...], w_ref[...], preferred_element_type=jnp.float32
    )

    @pl.when(pl.program_id(2) == pl.num_programs(2) - 1)
    def _store():
        o_ref[...] = (acc_ref[...] + b_ref[...]).astype(o_ref.dtype)


def pallas_linear(x2d, w_kn, b_1n, out_dtype,
                  tm_target=512, tn_target=512, tk_target=512):
    """y = x2d @ w_kn + b  with w stored as (K, N) (already transposed)."""
    M, K = x2d.shape
    _, N = w_kn.shape
    tm, Mp = _tile_and_pad(M, tm_target, 16)    # 16: bf16 sublane packing
    tn, Np = _tile_and_pad(N, tn_target, 128)
    tk, Kp = _tile_and_pad(K, tk_target, 128)

    if Mp != M or Kp != K:
        x2d = jnp.pad(x2d, ((0, Mp - M), (0, Kp - K)))
    if Kp != K or Np != N:
        w_kn = jnp.pad(w_kn, ((0, Kp - K), (0, Np - N)))
    if Np != N:
        b_1n = jnp.pad(b_1n, ((0, 0), (0, Np - N)))

    grid = (Mp // tm, Np // tn, Kp // tk)
    out = pl.pallas_call(
        linear_kernel,
        out_shape=jax.ShapeDtypeStruct((Mp, Np), out_dtype),
        grid_spec=pltpu.PrefetchScalarGridSpec(
            num_scalar_prefetch=0,
            grid=grid,
            in_specs=[
                pl.BlockSpec((tm, tk), lambda i, j, k: (i, k)),
                pl.BlockSpec((tk, tn), lambda i, j, k: (k, j)),
                pl.BlockSpec((1, tn), lambda i, j, k: (0, j)),
            ],
            out_specs=pl.BlockSpec((tm, tn), lambda i, j, k: (i, j)),
            scratch_shapes=[pltpu.VMEM((tm, tn), jnp.float32)],
        ),
        compiler_params=pltpu.CompilerParams(
            dimension_semantics=("parallel", "parallel", "arbitrary"),
            vmem_limit_bytes=_VMEM_LIMIT_BYTES,
        ),
    )(x2d, w_kn, b_1n)
    if Mp != M or Np != N:
        out = out[:M, :N]
    return out


# ----------------------------------------------------------------------------
# Flash-style bi-attention kernel (online softmax over visual T chunks)
# ----------------------------------------------------------------------------
def bi_attn_kernel(qv_ref, k_ref, o_ref, m_ref, l_ref, acc_ref, *,
                   heads_per_group, head_dim, t_chunk, t_actual, t_padded):
    # Blocks (one (batch, head_group) pair, one T chunk per step):
    #   qv: (1, tT, 2*Gw)  -- [q_group | vv_group] columns, scale folded into q
    #   k : (1, S,  Gw)
    #   o : (1, S,  Gw)    -- resident across the T axis, written at the last chunk
    # Scratch (persist across T chunks):
    #   m, l: (Hg, S, 1) f32 running max / denominator per head
    #   acc : (Hg, S, D) f32 running numerator per head
    t = pl.program_id(2)
    gw = heads_per_group * head_dim
    needs_mask = (t_padded != t_actual)

    @pl.when(t == 0)
    def _init():
        m_ref[...] = jnp.full_like(m_ref, -jnp.inf)
        l_ref[...] = jnp.zeros_like(l_ref)
        acc_ref[...] = jnp.zeros_like(acc_ref)

    if needs_mask:
        col = t * t_chunk + lax.broadcasted_iota(jnp.int32, (1, t_chunk), 1)
        valid = col < t_actual                       # (1, tT)

    # Small static loop over the (1-4) heads inside a lane-aligned group; the outer
    # head dimension is the "group" grid axis, and T is tiled by the grid, so the
    # per-iteration live set here is only (S, tT) + (tT, D) per head.
    for h in range(heads_per_group):
        lo = h * head_dim
        hi = lo + head_dim
        qh = qv_ref[0, :, lo:hi]                     # (tT, D)
        vh = qv_ref[0, :, gw + lo:gw + hi]           # (tT, D)
        kh = k_ref[0, :, lo:hi]                      # (S, D)

        # Transposed scores directly on the MXU: (S, tT) = K_h . Q_h^T (contract D).
        st = lax.dot_general(
            kh, qh, (((1,), (1,)), ((), ())),
            preferred_element_type=jnp.float32,
        )
        # clamp_min_for_underflow / clamp_max_for_overflow
        st = jnp.clip(st, -50000.0, 50000.0)
        if needs_mask:
            st = jnp.where(valid, st, -jnp.inf)      # mask zero-padded T positions

        m_prev = m_ref[h]                            # (S, 1)
        m_new = jnp.maximum(m_prev, jnp.max(st, axis=-1, keepdims=True))
        alpha = jnp.exp(m_prev - m_new)
        p = jnp.exp(st - m_new)                      # (S, tT) f32
        l_ref[h] = alpha * l_ref[h] + jnp.sum(p, axis=-1, keepdims=True)
        acc_ref[h] = alpha * acc_ref[h] + jnp.dot(
            p.astype(vh.dtype), vh, preferred_element_type=jnp.float32)
        m_ref[h] = m_new

    @pl.when(t == pl.num_programs(2) - 1)
    def _finalize():
        outs = []
        for h in range(heads_per_group):
            inv_l = pl.reciprocal(l_ref[h], approx=True)
            outs.append(acc_ref[h] * inv_l)
        # Single lane-dense store of the whole group (no per-head masked stores).
        o_ref[0] = jnp.concatenate(outs, axis=-1).astype(o_ref.dtype)


def _pick_seq_tile(T, target=512):
    """T-chunk size (multiple of 8) and padded T."""
    if T <= target:
        return T, T
    t = max(8, (target // 8) * 8)
    if T % t == 0:
        return t, T
    return t, _round_up(T, t)


def pallas_bi_attention(qv, k, heads_per_group, head_dim, out_dtype,
                        t_chunk_target=512):
    """qv: (B, T, 2E) group-interleaved [q_g | vv_g] columns; k: (B, S, E).

    Returns (B, S, E) language-side attention output (heads in standard order).
    """
    B, T, twoE = qv.shape
    E = twoE // 2
    S = k.shape[1]
    gw = heads_per_group * head_dim
    G = E // gw                                  # head groups (parallel grid axis)
    tT, Tp = _pick_seq_tile(T, t_chunk_target)
    if Tp != T:
        qv = jnp.pad(qv, ((0, 0), (0, Tp - T), (0, 0)))
    NT = Tp // tT

    kernel = functools.partial(
        bi_attn_kernel, heads_per_group=heads_per_group, head_dim=head_dim,
        t_chunk=tT, t_actual=T, t_padded=Tp)

    return pl.pallas_call(
        kernel,
        out_shape=jax.ShapeDtypeStruct((B, S, E), out_dtype),
        grid_spec=pltpu.PrefetchScalarGridSpec(
            num_scalar_prefetch=0,
            grid=(B, G, NT),
            in_specs=[
                pl.BlockSpec((1, tT, 2 * gw), lambda b, g, t: (b, t, g)),
                pl.BlockSpec((1, S, gw), lambda b, g, t: (b, 0, g)),
            ],
            out_specs=pl.BlockSpec((1, S, gw), lambda b, g, t: (b, 0, g)),
            scratch_shapes=[
                pltpu.VMEM((heads_per_group, S, 1), jnp.float32),        # m
                pltpu.VMEM((heads_per_group, S, 1), jnp.float32),        # l
                pltpu.VMEM((heads_per_group, S, head_dim), jnp.float32),  # acc
            ],
        ),
        compiler_params=pltpu.CompilerParams(
            dimension_semantics=("parallel", "parallel", "arbitrary"),
            vmem_limit_bytes=_VMEM_LIMIT_BYTES,
        ),
    )(qv, k)


# ----------------------------------------------------------------------------
# Module wrapper
# ----------------------------------------------------------------------------
def _pick_heads_per_group(num_heads, head_dim):
    """Smallest head count whose lane width is a multiple of 128 (falls back to all)."""
    for hg in range(1, num_heads + 1):
        if num_heads % hg == 0 and (hg * head_dim) % 128 == 0:
            return hg
    return num_heads


class BiMultiHeadAttentionPallas:
    def __init__(self, v_dim, l_dim, embed_dim, num_heads, key,
                 dropout=0.1, use_bf16=True, output_dtype=jnp.float32):
        assert embed_dim % num_heads == 0
        self.v_dim = v_dim
        self.l_dim = l_dim
        self.embed_dim = embed_dim
        self.num_heads = num_heads
        self.head_dim = embed_dim // num_heads
        self.scale = self.head_dim ** (-0.5)
        self.dropout = dropout  # identity at eval time
        self.compute_dtype = jnp.bfloat16 if use_bf16 else jnp.float32
        self.output_dtype = output_dtype
        self.heads_per_group = _pick_heads_per_group(num_heads, self.head_dim)
        self.group_width = self.heads_per_group * self.head_dim
        self.num_groups = embed_dim // self.group_width

        def xavier_uniform(k, out_dim, in_dim):
            bound = (6.0 / (in_dim + out_dim)) ** 0.5
            return jax.random.uniform(
                k, (out_dim, in_dim), jnp.float32, minval=-bound, maxval=bound
            )

        k1, k2, k3, k4 = jax.random.split(key, 4)
        # Raw f32 parameters in PyTorch (out, in) layout -- used by the reference.
        self.v_proj_w = xavier_uniform(k1, embed_dim, v_dim)
        self.v_proj_b = jnp.zeros((embed_dim,), jnp.float32)
        self.l_proj_w = xavier_uniform(k2, embed_dim, l_dim)
        self.l_proj_b = jnp.zeros((embed_dim,), jnp.float32)
        self.values_v_proj_w = xavier_uniform(k3, embed_dim, v_dim)
        self.values_v_proj_b = jnp.zeros((embed_dim,), jnp.float32)
        self.out_l_proj_w = xavier_uniform(k4, l_dim, embed_dim)
        self.out_l_proj_b = jnp.zeros((l_dim,), jnp.float32)

        cd = self.compute_dtype
        # Fused (scaled q-proj || values-proj) weight, columns interleaved PER HEAD
        # GROUP so the attention kernel can grab [q_g | vv_g] as one contiguous,
        # lane-aligned column block.  Pre-transposed to (K, N) layout.
        qw = self.v_proj_w * self.scale             # (E, v_dim)
        vw = self.values_v_proj_w                   # (E, v_dim)
        qb = self.v_proj_b * self.scale
        vb = self.values_v_proj_b
        blocks_w, blocks_b = [], []
        gw = self.group_width
        for g in range(self.num_groups):
            sl = slice(g * gw, (g + 1) * gw)
            blocks_w += [qw[sl], vw[sl]]
            blocks_b += [qb[sl], vb[sl]]
        qv_w = jnp.concatenate(blocks_w, axis=0)                 # (2E, v_dim)
        qv_b = jnp.concatenate(blocks_b, axis=0)                 # (2E,)
        self._qv_w = qv_w.T.astype(cd)                           # (v_dim, 2E)
        self._qv_b = qv_b.reshape(1, 2 * embed_dim)              # f32
        self._l_w = self.l_proj_w.T.astype(cd)                   # (l_dim, E)
        self._l_b = self.l_proj_b.reshape(1, embed_dim)          # f32
        self._out_w = self.out_l_proj_w.T.astype(cd)             # (E, l_dim)
        self._out_b = self.out_l_proj_b.reshape(1, l_dim)        # f32

    def __call__(self, v, l):
        bsz, tgt_len, _ = v.shape
        src_len = l.shape[1]
        E = self.embed_dim
        cd = self.compute_dtype

        v2d = v.reshape(bsz * tgt_len, self.v_dim).astype(cd)
        l2d = l.reshape(bsz * src_len, self.l_dim).astype(cd)

        # --- fused projections (tiled Pallas matmul+bias kernels) ---
        qv2d = pallas_linear(v2d, self._qv_w, self._qv_b, out_dtype=cd)  # (B*T, 2E)
        k2d = pallas_linear(l2d, self._l_w, self._l_b, out_dtype=cd)     # (B*S, E)

        # Free reshapes only -- the fused qv buffer goes to the attention kernel as-is
        # (no wrapper-side column slicing / extra HBM round trip).
        qv = qv2d.reshape(bsz, tgt_len, 2 * E)
        k = k2d.reshape(bsz, src_len, E)

        # --- attention core: flash-style online softmax over visual chunks ---
        attn = pallas_bi_attention(qv, k, self.heads_per_group, self.head_dim,
                                   out_dtype=cd)                 # (B, S, E)

        # TODO(synk): F.dropout(p=0.1) is identity at eval time; training-mode dropout
        # (stateful PRNG masking of attention probs) is not implemented here.

        # --- output projection ---
        out2d = pallas_linear(
            attn.reshape(bsz * src_len, E), self._out_w, self._out_b,
            out_dtype=self.output_dtype,
        )
        return out2d.reshape(bsz, src_len, self.l_dim)


# ----------------------------------------------------------------------------
# Pure-JAX f32 reference for correctness sanity check
# ----------------------------------------------------------------------------
def reference_forward(mod, v, l):
    bsz, tgt_len, _ = v.shape
    src_len = l.shape[1]
    q = (v @ mod.v_proj_w.T + mod.v_proj_b) * mod.scale
    k = l @ mod.l_proj_w.T + mod.l_proj_b
    vv = v @ mod.values_v_proj_w.T + mod.values_v_proj_b

    def split(x, seq):
        return x.reshape(bsz, seq, mod.num_heads, mod.head_dim).transpose(0, 2, 1, 3)

    q, k, vv = split(q, tgt_len), split(k, src_len), split(vv, tgt_len)
    s = jnp.einsum("bhtd,bhsd->bhts", q, k)
    s = jnp.clip(s, -50000.0, 50000.0)
    p = jax.nn.softmax(jnp.swapaxes(s, -1, -2), axis=-1)        # (B, H, src, tgt)
    o = jnp.einsum("bhst,bhtd->bhsd", p, vv)
    o = o.transpose(0, 2, 1, 3).reshape(bsz, src_len, mod.embed_dim)
    return o @ mod.out_l_proj_w.T + mod.out_l_proj_b


if __name__ == "__main__":
    # Small, deterministic shapes
    bsz, tgt_len, src_len = 2, 16, 8
    v_dim, l_dim, embed_dim, num_heads = 32, 24, 32, 4

    key = jax.random.PRNGKey(0)
    kp, kv, kl = jax.random.split(key, 3)

    mod = BiMultiHeadAttentionPallas(v_dim, l_dim, embed_dim, num_heads, kp,
                                     use_bf16=True)

    v = jax.random.normal(kv, (bsz, tgt_len, v_dim), jnp.float32)
    l = jax.random.normal(kl, (bsz, src_len, l_dim), jnp.float32)

    out = mod(v, l)
    out = jax.block_until_ready(out)

    ref = reference_forward(mod, v, l)
    assert out.shape == (bsz, src_len, l_dim)
    # bf16 MXU operands + approx reciprocal => relaxed tolerance vs. f32 reference.
    tol = 5e-2 if mod.compute_dtype == jnp.bfloat16 else 1e-4
    assert jnp.allclose(out, ref, atol=tol, rtol=tol)

    print("KERNEL_OK")
</pallas_src>

<mosaic_0001>
module attributes {stable_mosaic.version = 11 : i64} {
  func.func @linear_kernel(%arg0: i32, %arg1: i32, %arg2: i32, %arg3: memref<32x32xbf16, #tpu.memory_space<vmem>>, %arg4: memref<32x64xbf16, #tpu.memory_space<vmem>>, %arg5: memref<1x64xf32, #tpu.memory_space<vmem>>, %arg6: memref<32x64xbf16, #tpu.memory_space<vmem>>, %arg7: memref<32x64xf32, #tpu.memory_space<vmem>>) attributes {dimension_semantics = [#tpu.dimension_semantics<parallel>, #tpu.dimension_semantics<parallel>, #tpu.dimension_semantics<arbitrary>], iteration_bounds = array<i64: 1, 1, 1>, scalar_prefetch = 0 : i64, scratch_operands = 1 : i64, tpu.core_type = #tpu.core_type<tc>, window_params = [{transform_indices = @transform_0, window_bounds = array<i64: 32, 32>}, {transform_indices = @transform_1, window_bounds = array<i64: 32, 64>}, {transform_indices = @transform_2, window_bounds = array<i64: 1, 64>}, {transform_indices = @transform_3, window_bounds = array<i64: 32, 64>}]} {
    %c0_i32 = arith.constant 0 : i32
    %0 = arith.cmpi eq, %arg2, %c0_i32 : i32
    %1 = arith.extui %0 : i1 to i32
    %c0_i32_0 = arith.constant 0 : i32
    %2 = arith.cmpi ne, %1, %c0_i32_0 : i32
    scf.if %2 {
      %cst_10 = arith.constant 0.000000e+00 : f32
      %12 = vector.broadcast %cst_10 : f32 to vector<32x64xf32>
      %c0_11 = arith.constant 0 : index
      %c0_12 = arith.constant 0 : index
      %13 = vector.load %arg7[%c0_11, %c0_12] : memref<32x64xf32, #tpu.memory_space<vmem>>, vector<32x64xf32>
      tpu.vector_store %arg7[%c0_11, %c0_12], %12 {strides = array<i32>} : memref<32x64xf32, #tpu.memory_space<vmem>>, vector<32x64xf32>,
    } else {
    }
    %c0 = arith.constant 0 : index
    %c0_1 = arith.constant 0 : index
    %3 = vector.load %arg7[%c0, %c0_1] : memref<32x64xf32, #tpu.memory_space<vmem>>, vector<32x64xf32>
    %c0_2 = arith.constant 0 : index
    %c0_3 = arith.constant 0 : index
    %4 = vector.load %arg3[%c0_2, %c0_3] : memref<32x32xbf16, #tpu.memory_space<vmem>>, vector<32x32xbf16>
    %c0_4 = arith.constant 0 : index
    %c0_5 = arith.constant 0 : index
    %5 = vector.load %arg4[%c0_4, %c0_5] : memref<32x64xbf16, #tpu.memory_space<vmem>>, vector<32x64xbf16>
    %cst = arith.constant dense<0.000000e+00> : vector<32x64xf32>
    %6 = tpu.matmul %4, %5, %cst {dimension_numbers = #tpu.dot_dimension_numbers<[1], [0], [0], [1], [0, 0, 1, 1], [], []>} : vector<32x32xbf16>, vector<32x64xbf16>, vector<32x64xf32> -> vector<32x64xf32>
    %7 = arith.addf %3, %6 : vector<32x64xf32>
    %c0_6 = arith.constant 0 : index
    %c0_7 = arith.constant 0 : index
    %8 = vector.load %arg7[%c0_6, %c0_7] : memref<32x64xf32, #tpu.memory_space<vmem>>, vector<32x64xf32>
    tpu.vector_store %arg7[%c0_6, %c0_7], %7 {strides = array<i32>} : memref<32x64xf32, #tpu.memory_space<vmem>>, vector<32x64xf32>,
    %c0_i32_8 = arith.constant 0 : i32
    %9 = arith.cmpi eq, %arg2, %c0_i32_8 : i32
    %10 = arith.extui %9 : i1 to i32
    %c0_i32_9 = arith.constant 0 : i32
    %11 = arith.cmpi ne, %10, %c0_i32_9 : i32
    scf.if %11 {
      %c0_10 = arith.constant 0 : index
      %c0_11 = arith.constant 0 : index
      %12 = vector.load %arg7[%c0_10, %c0_11] : memref<32x64xf32, #tpu.memory_space<vmem>>, vector<32x64xf32>
      %c0_12 = arith.constant 0 : index
      %c0_13 = arith.constant 0 : index
      %13 = vector.load %arg5[%c0_12, %c0_13] : memref<1x64xf32, #tpu.memory_space<vmem>>, vector<1x64xf32>
      %14 = vector.broadcast %13 : vector<1x64xf32> to vector<32x64xf32>
      %15 = arith.addf %12, %14 : vector<32x64xf32>
      %16 = arith.truncf %15 : vector<32x64xf32> to vector<32x64xbf16>
      %c0_14 = arith.constant 0 : index
      %c0_15 = arith.constant 0 : index
      %17 = vector.load %arg6[%c0_14, %c0_15] : memref<32x64xbf16, #tpu.memory_space<vmem>>, vector<32x64xbf16>
      tpu.vector_store %arg6[%c0_14, %c0_15], %16 {strides = array<i32>} : memref<32x64xbf16, #tpu.memory_space<vmem>>, vector<32x64xbf16>,
    } else {
    }
    return
  }
  func.func @transform_0(%arg0: i32, %arg1: i32, %arg2: i32) -> (i32, i32) {
    %c0_i32 = arith.constant 0 : i32
    return %arg0, %arg2 : i32, i32
  }
  func.func @transform_1(%arg0: i32, %arg1: i32, %arg2: i32) -> (i32, i32) {
    %c0_i32 = arith.constant 0 : i32
    return %arg2, %arg1 : i32, i32
  }
  func.func @transform_2(%arg0: i32, %arg1: i32, %arg2: i32) -> (i32, i32) {
    %c0_i32 = arith.constant 0 : i32
    %c0_i32_0 = arith.constant 0 : i32
    return %c0_i32, %arg1 : i32, i32
  }
  func.func @transform_3(%arg0: i32, %arg1: i32, %arg2: i32) -> (i32, i32) {
    %c0_i32 = arith.constant 0 : i32
    return %arg0, %arg1 : i32, i32
  }
}

</mosaic_0001>

<bundles_post_ra>
// kernel: tpu_custom_call.1
= control target key start
LH: loop header
LB: loop body
LE: loop exit
PB: predicated region body
PF: predicated region fallthrough
CT: control target
= control target key end

     0   :  { %8 = vsyncpa [#allocation4], 0  ;;  %s338_s0 = inlined_call_operand.hbm [shape: bf16[32,32], index: 0, kind: input, shape index: {}]   ;;  %s339_s1 = inlined_call_operand.hbm [shape: bf16[32,64], index: 1, kind: input, shape index: {}]   ;;  %s340_s2 = inlined_call_operand.vmem [shape: f32[1,64], index: 2, kind: input, shape index: {}]   ;;  %s341_s3 = inlined_call_operand.hbm [shape: bf16[32,64], index: 3, kind: output, shape index: {}]  }
   0x1   :  { %9 = vsyncpa [#allocation7], 0 }
   0x2   :  { %10 = vsyncpa [#allocation5], 0  ;;  %s15_s14 = sshll.u32 %s338_s0, 4  ;;  %s279_s15 = smov [#allocation3]   ;;  %s16_s14 = int_to_ptr.hbm [resolvable:$true] %s15_s14 }
   0x3   :  { %s17_s16 = sshll.u32 %s279_s15, 4  ;;  %s28_s19 = sshll.u32 %s339_s1, 4  ;;  %s18_s16 = int_to_ptr.vmem [resolvable:$true] %s17_s16  ;;  %s29_s19 = int_to_ptr.hbm [resolvable:$true] %s28_s19 }
   0x4   :  { %s280_s20 = smov 64   ;;  %s281_s21 = smov 4  }
   0x5   :  { %23 = dma.hbm_to_vmem [thread:$0]  %s16_s14, 256, %s18_s16, [#allocation4], %s280_s20, %s280_s20, %s281_s21  }
   0x6   :  { %s282_s22 = smov [#allocation6]  }
   0x7   :  { %s30_s23 = sshll.u32 %s282_s22, 4  ;;  %s31_s23 = int_to_ptr.vmem [resolvable:$true] %s30_s23 }
   0x8   :  { %36 = dma.hbm_to_vmem [thread:$0]  %s29_s19, 256, %s31_s23, [#allocation7], %s280_s20, %s280_s20, %s281_s21  }
   0x9   :  { %273 = dma.done.wait [#allocation4], 256  }
   0xa   :  { %274 = vsyncadd [#allocation4], 4294967040 }
   0xb   :  { %275 = dma.done.wait [#allocation7], 256  }
   0xc   :  { %276 = vsyncadd [#allocation7], 4294967040  ;;  %vm52_vm0 = vcmask 523264   ;;  %v283_v0 = vmov 0.0   ;;  %v191_v1 = vld [vmem:[#allocation6 + $0x8] sm:$0xff]  ;;  %v190_v2 = vld [vmem:[#allocation6] sm:$0xff] }
   0xd   :  { %53 = vst.msk [vmem:[#allocation2] sm:$0xff] %vm52_vm0, %v283_v0  ;;  %104 = vmatpush.bf16.msra.mxu0 %v191_v1  ;;  %192 = vmatpush.bf16.msra.mxu1 %v191_v1  ;;  %v188_v3 = vld [vmem:[#allocation3] sm:$0xff]  ;;  %v189_v4 = vld [vmem:[#allocation3 + $0x8] sm:$0xff]  ;;  %vm91_vm1 = vcmask 261120   ;;  %vm145_vm2 = vcmask 519168   ;;  %s156_s27 = sshll.u32 %s341_s3, 4  ;;  %s157_s27 = int_to_ptr.hbm [resolvable:$true] %s156_s27 }
   0xe   :  { %54 = vst.msk [vmem:[#allocation2 + $0x8] sm:$0xff] %vm52_vm0, %v283_v0  ;;  %v200_v13 = vld [vmem:[%s340_s2] ss:$0 sm:$0xff]  ;;  %s284_s2 = smov [#allocation8]  }
   0xf   :  { %55 = vst.msk [vmem:[#allocation2 + $0x10] sm:$0xff] %vm52_vm0, %v283_v0  ;;  %s154_s24 = sshll.u32 %s284_s2, 4  ;;  %s155_s24 = int_to_ptr.vmem [resolvable:$true] %s154_s24 }
  0x10   :  { %56 = vst.msk [vmem:[#allocation2 + $0x18] sm:$0xff] %vm52_vm0, %v283_v0 }
  0x11   :  { %105 = vmatpush.bf16.msra.mxu0 %v190_v2  ;;  %193 = vmatpush.bf16.msra.mxu1 %v190_v2 }
  0x14   :  { %186 = vmatmul.msk.bf16.vlgmr.msra.gmra.mxu0 %vm91_vm1, %v188_v3  ;;  %187 = vmatmul.msk.bf16.vlgmr.msra.gmra.mxu1 %vm91_vm1, %v189_v4  ;;  %v57_v5 = vld [vmem:[#allocation2] sm:$0xff] }
  0x15   :  { %v58_v11 = vld [vmem:[#allocation2 + $0x8] sm:$0xff] }
  0x16   :  { %v59_v6 = vld [vmem:[#allocation2 + $0x10] sm:$0xff] }
  0x17   :  { %v60_v12 = vld [vmem:[#allocation2 + $0x18] sm:$0xff] }
  0x91   :  { %v107_v7 = vpop.f32.mrf.mxu0  ;;  %v112_v8 = vpop.f32.mrf.mxu1 }
  0x92   :  { %v117_v9 = vadd.f32 %v107_v7, %v57_v5  ;;  %v119_v10 = vadd.f32 %v112_v8, %v59_v6 }
  0x94   :  { %122 = vst.msk [vmem:[#allocation2] sm:$0xff] %vm52_vm0, %v117_v9 }
  0x95   :  { %124 = vst.msk [vmem:[#allocation2 + $0x10] sm:$0xff] %vm52_vm0, %v119_v10 }
  0x99   :  { %v109_v14 = vpop.f32.mrf.mxu0  ;;  %v114_v15 = vpop.f32.mrf.mxu1 }
  0x9a   :  { %v118_v16 = vadd.f32 %v109_v14, %v58_v11  ;;  %v120_v17 = vadd.f32 %v114_v15, %v60_v12 }
  0x9b   :  { %v129_v18 = vld [vmem:[#allocation2] sm:$0xff] }
  0x9c   :  { %123 = vst.msk [vmem:[#allocation2 + $0x8] sm:$0xff] %vm52_vm0, %v118_v16  ;;  %v131_v19 = vld [vmem:[#allocation2 + $0x10] sm:$0xff]  ;;  %v137_v20 = vadd.f32 %v200_v13, %v129_v18 }
  0x9d   :  { %125 = vst.msk [vmem:[#allocation2 + $0x18] sm:$0xff] %vm52_vm0, %v120_v17  ;;  %v139_v21 = vadd.f32 %v200_v13, %v131_v19 }
  0x9e   :  { %v141_v22 = vpack.c.bf16 %v137_v20, %v137_v20 }
  0x9f   :  { %v143_v23 = vpack.c.bf16 %v139_v21, %v139_v21 }
  0xa0   :  { %146 = vst.msk [vmem:[#allocation8] sm:$0xf] %vm145_vm2, %v141_v22 }
  0xa1   :  { %148 = vst.msk [vmem:[#allocation8 + $0x8] sm:$0xf] %vm145_vm2, %v143_v23 }
  0xa3   :  { %v130_v24 = vld [vmem:[#allocation2 + $0x8] sm:$0xff] }
  0xa4   :  { %v132_v25 = vld [vmem:[#allocation2 + $0x18] sm:$0xff]  ;;  %v138_v26 = vadd.f32 %v200_v13, %v130_v24 }
  0xa5   :  { %v140_v27 = vadd.f32 %v200_v13, %v132_v25 }
  0xa6   :  { %v142_v28 = vpack.c.bf16 %v138_v26, %v138_v26 }
  0xa7   :  { %v144_v29 = vpack.c.bf16 %v140_v27, %v140_v27 }
  0xa8   :  { %147 = vst.msk [vmem:[#allocation8 + $0x4] sm:$0xf] %vm145_vm2, %v142_v28 }
  0xa9   :  { %149 = vst.msk [vmem:[#allocation8 + $0xc] sm:$0xf] %vm145_vm2, %v144_v29 }
  0xaa   :  { %162 = dma.vmem_to_hbm [thread:$0]  %s155_s24, 256, %s157_s27, [#allocation5], %s280_s20, %s280_s20, %s281_s21  }
  0xab   :  { %277 = dma.done.wait [#allocation5], 256  }
  0xac   :  { %278 = vsyncadd [#allocation5], 4294967040 }
  0xad   :  { %167 = vsyncpa [#allocation4], 1 }
  0xae   :  { %168 = vsyncpa [#allocation7], 1 }
  0xaf   :  { %169 = vsyncpa [#allocation5], 1 }

</bundles_post_ra>
